<compile_context>
chip_gen: v7x
topology: tpu7x:2x2x1
jax: 0.10.0
libtpu: 0.0.40
codegen_flags: <defaults>
</compile_context>

<pallas_src>
import jax
import jax.numpy as jnp
import numpy as np
from jax.experimental import pallas as pl
from jax.experimental.pallas import tpu as pltpu


def _avgpool_p4_kernel(pool_ref, x_ref, o_ref):
    # pool_ref: (2*k*W, k*Wh)  static 0.25/0 pooling matrix (constant block -> fetched once)
    # x_ref:    (RB, 2*k*W)    RB view rows; each holds 2*k consecutive input image rows
    # o_ref:    (RB, k*Wh)     the k pooled rows per view row, lane-dense
    o_ref[...] = jnp.dot(
        x_ref[...], pool_ref[...], preferred_element_type=jnp.float32
    ).astype(o_ref.dtype)


def _pooling_matrix(W, k, dtype):
    """(2kW, kWh) matrix P with P[i, o] = 0.25 iff input element i of a view row
    falls inside the 2x2 window of output element o of that view row."""
    Wh = W // 2
    i = np.arange(2 * k * W)
    o = np.arange(k * Wh)
    a, c = i // W, i % W          # input row-within-chunk, column
    b, j = o // Wh, o % Wh        # output row-within-chunk, column
    hit = (a[:, None] // 2 == b[None, :]) & (c[:, None] // 2 == j[None, :])
    return jnp.asarray(hit.astype(np.float32) * 0.25, dtype=dtype)


def _round8(v):
    return (v // 8) * 8


def _choose_tiles(n_out, W, itemsize):
    """Pick (k, RB, NB): pooled rows folded per lane-dense view row, view rows per
    grid step, and the number of view rows."""
    Wh = W // 2
    # Lane-dense output: aim for k*Wh ~ 128, but cap 2*k*W at ~512 so the pooling
    # matmul stays HBM-bound on every generation and the pooling matrix stays tiny.
    k_cap = max(1, min(-(-128 // Wh), 256 // max(W, 1), n_out))
    k = 1
    for cand in range(k_cap, 0, -1):
        if n_out % cand == 0:     # fold must divide so the flat views are free reshapes
            k = cand
            break
    nb = n_out // k
    row_bytes = (2 * k * W + k * Wh) * itemsize
    budget = 4 << 20              # per (in+out) block; x2 double-buffering still leaves
                                  # plenty of headroom under v5e's 16 MiB scoped VMEM
                                  # default and v7x's 64 MiB physical VMEM.
    if nb <= 8:
        rb = nb                   # full extent is always a legal block shape
    else:
        rb = min(_round8(nb), max(8, _round8(budget // row_bytes)))
        if -(-nb // rb) < 2:      # keep >= 2 grid steps (v7x has 2 TensorCores)
            rb = max(8, _round8(-(-nb // 2)))
    return k, rb, nb


def avg_pooling_p4(x):
    """Forward of AvgPoolingP4: (B, C, 4, H, W) -> (B, C, 4, H//2, W//2)."""
    B, C, R, H, W = x.shape
    assert R == 4, "P4 feature maps carry 4 rotation channels"
    assert H % 2 == 0 and W % 2 == 0, "AvgPool2d(2, 2) with even spatial dims"
    Hh, Wh = H // 2, W // 2
    n_out = B * C * R * Hh                      # total pooled rows
    k, rb, nb = _choose_tiles(n_out, W, x.dtype.itemsize)

    # Free (bitcast) reshapes only -- no extra HBM passes.
    x2 = x.reshape(nb, 2 * k * W)
    pool = _pooling_matrix(W, k, x.dtype)

    out = pl.pallas_call(
        _avgpool_p4_kernel,
        out_shape=jax.ShapeDtypeStruct((nb, k * Wh), x.dtype),
        grid=(pl.cdiv(nb, rb),),
        in_specs=[
            # Constant block index: the pooling matrix is DMA'd once and reused.
            pl.BlockSpec((2 * k * W, k * Wh), lambda g: (0, 0)),
            pl.BlockSpec((rb, 2 * k * W), lambda g: (g, 0)),
        ],
        out_specs=pl.BlockSpec((rb, k * Wh), lambda g: (g, 0)),
        compiler_params=pltpu.CompilerParams(
            dimension_semantics=("parallel",)),
    )(pool, x2)

    return out.reshape(B, C, R, Hh, Wh)


if __name__ == "__main__":
    key = jax.random.PRNGKey(0)
    B, C, H, W = 2, 4, 16, 16
    x = jax.random.normal(key, (B, C, 4, H, W), dtype=jnp.float32)
    # Snap values to the bf16 grid so the correctness check is exact regardless of
    # the MXU's f32 matmul precision mode (products by 0.25 and the 4-term sums are
    # then exact on every path).
    x = x.astype(jnp.bfloat16).astype(jnp.float32)

    y = avg_pooling_p4(x)
    jax.block_until_ready(y)

    # Pure-JAX reference of the PyTorch forward.
    ref = (x.reshape(B, C * 4, H // 2, 2, W // 2, 2)
             .mean(axis=(3, 5))
             .reshape(B, C, 4, H // 2, W // 2))

    assert y.shape == (B, C, 4, H // 2, W // 2), y.shape
    assert jnp.allclose(y, ref, atol=1e-5, rtol=1e-5), float(jnp.max(jnp.abs(y - ref)))
    print("KERNEL_OK")
</pallas_src>

<mosaic_0001>
module attributes {stable_mosaic.version = 11 : i64} {
  func.func @_avgpool_p4_kernel(%arg0: i32, %arg1: memref<512x128xf32, #tpu.memory_space<vmem>>, %arg2: memref<8x512xf32, #tpu.memory_space<vmem>>, %arg3: memref<8x128xf32, #tpu.memory_space<vmem>>) attributes {dimension_semantics = [#tpu.dimension_semantics<parallel>], iteration_bounds = array<i64: 2>, scalar_prefetch = 0 : i64, scratch_operands = 0 : i64, tpu.core_type = #tpu.core_type<tc>, window_params = [{pipeline_mode = #tpu.pipeline_mode<synchronous>, transform_indices = @transform_0, window_bounds = array<i64: 512, 128>}, {transform_indices = @transform_1, window_bounds = array<i64: 8, 512>}, {transform_indices = @transform_2, window_bounds = array<i64: 8, 128>}]} {
    %c0 = arith.constant 0 : index
    %c0_0 = arith.constant 0 : index
    %0 = vector.load %arg2[%c0, %c0_0] : memref<8x512xf32, #tpu.memory_space<vmem>>, vector<8x512xf32>
    %c0_1 = arith.constant 0 : index
    %c0_2 = arith.constant 0 : index
    %1 = vector.load %arg1[%c0_1, %c0_2] : memref<512x128xf32, #tpu.memory_space<vmem>>, vector<512x128xf32>
    %cst = arith.constant dense<0.000000e+00> : vector<8x128xf32>
    %2 = tpu.matmul %0, %1, %cst {dimension_numbers = #tpu.dot_dimension_numbers<[1], [0], [0], [1], [0, 0, 1, 1], [], []>} : vector<8x512xf32>, vector<512x128xf32>, vector<8x128xf32> -> vector<8x128xf32>
    %c0_3 = arith.constant 0 : index
    %c0_4 = arith.constant 0 : index
    %3 = vector.load %arg3[%c0_3, %c0_4] : memref<8x128xf32, #tpu.memory_space<vmem>>, vector<8x128xf32>
    tpu.vector_store %arg3[%c0_3, %c0_4], %2 {strides = array<i32>} : memref<8x128xf32, #tpu.memory_space<vmem>>, vector<8x128xf32>,
    return
  }
  func.func @transform_0(%arg0: i32) -> (i32, i32) {
    %c0_i32 = arith.constant 0 : i32
    %c0_i32_0 = arith.constant 0 : i32
    %c0_i32_1 = arith.constant 0 : i32
    return %c0_i32, %c0_i32_0 : i32, i32
  }
  func.func @transform_1(%arg0: i32) -> (i32, i32) {
    %c0_i32 = arith.constant 0 : i32
    %c0_i32_0 = arith.constant 0 : i32
    return %arg0, %c0_i32 : i32, i32
  }
  func.func @transform_2(%arg0: i32) -> (i32, i32) {
    %c0_i32 = arith.constant 0 : i32
    %c0_i32_0 = arith.constant 0 : i32
    return %arg0, %c0_i32 : i32, i32
  }
}

</mosaic_0001>

<bundles_post_ra>
// kernel: tpu_custom_call.1
= control target key start
LH: loop header
LB: loop body
LE: loop exit
PB: predicated region body
PF: predicated region fallthrough
CT: control target
= control target key end

     0   :  { %7 = vsyncpa [#allocation3], 0  ;;  %s1042_s0 = inlined_call_operand.hbm [shape: f32[512,128], index: 0, kind: input, shape index: {}]   ;;  %s1043_s1 = inlined_call_operand.hbm [shape: f32[16,512], index: 1, kind: input, shape index: {}]   ;;  %s1044_s2 = inlined_call_operand.hbm [shape: f32[16,128], index: 2, kind: output, shape index: {}]  }
   0x1   :  { %8 = vsyncpa [#allocation6], 0 }
   0x2   :  { %10 = vsyncpa [#allocation6 + $0x1], 0 }
   0x3   :  { %11 = vsyncpa [#allocation4], 0 }
   0x4   :  { %13 = vsyncpa [#allocation4 + $0x1], 0  ;;  %s839_s9 = smov 0   ;;  %s841_s10 = smov 0  }
   0x5   :  { %s843_s11 = smov 0   ;;  %s845_s12 = smov 0  }
   0x6 LB: > { %s860_s13 = sadd.s32 4294967295, %s817_s12   ;;  %s480_s14 = sadd.s32 4294967294, %s817_s12   ;;  %s817_s12 = sphi %s845_s12, %s1064_s12   ;;  %s813_s11 = sphi %s843_s11, %s1063_s11   ;;  %s809_s10 = sphi %s841_s10, %s1062_s10   ;;  %s805_s9 = sphi %s839_s9, %s1061_s9  }
   0x7   : > { %p60_p0 = scmp.ne.s32.totalorder %s809_s10, %s805_s9  ;;  %p1045_p1 = scmp.eq.s32.totalorder %s860_s13, 0 }
   0x8   : > { %p90_p3 = scmp.eq.s32.totalorder %s480_s14, 1  ;;  %p481_p5 = scmp.ge.s32.totalorder %s817_s12, 1 }
   0x9   : > { %p869_p4 = por %p1045_p1, %p60_p0  ;;  %p97_p7 = scmp.lt.s32.totalorder %s817_s12, 3 }
   0xa   : > { %p874_p6 = por %p90_p3, %p60_p0  ;;  %s819_s18 = smov [#allocation2]  }
   0xb   : > { %s1048_s15 = scalar_select %p869_p4, 1, 0 }
   0xc   : > { %s1049_s16 = scalar_select %p874_p6, 1, 0 }
   0xd   : > { %p879_p8 = pnand %p481_p5, %p97_p7  ;;  %s109_s19 = sshll.u32 %s819_s18, 4  ;;  %s883_s19 = int_to_ptr.vmem [resolvable:$true] %s109_s19 }
   0xe   : > { %s895_s21 = sadd.s32 1, %s817_s12   ;;  %s47_s22 = sadd.s32 1, %s813_s11 }
   0xf   : > { %s1050_s17 = scalar_select %p879_p8, 1, 0 }
  0x10   : > { %p638_p9 = pneg %p879_p8  ;;  %s44_s23 = ssub.s32 %s817_s12, %s895_s21 }
  0x11   : > { %s689_s26 = scalar_lea.hbm %s1042_s0, 8192 }
  0x12   : > { %p890_p11 = pnand %p638_p9, %p1045_p1  ;;  %p690_p12 = scmp.ne.s32.totalorder %s1042_s0, %s689_s26 }
  0x13   : > { %p696_p5 = scmp.lt.u32.totalorder %s689_s26, %s1042_s0 }
  0x14   : > { %p691_p13 = pneg %p890_p11 }
  0x16   : > { %p692_p0 = pnand %p691_p13, %p690_p12 }
  0x18   : > { %p693_p3 = pneg %p692_p0 }
  0x1a   : > { %p698_p7 = pnand %p696_p5, %p693_p3 }
  0x1c   : > { %701 = shalt.err (!%p698_p7)
}
  0x1d   : > { %s702_s3 = scalar_lea.vmem %s883_s19, 8192  ;;  %p710_p2 = scmp.lt.s32.totalorder %s883_s19, %s883_s19 }
  0x1e   : > { %p703_p9 = scmp.ne.s32.totalorder %s883_s19, %s702_s3  ;;  %p711_p6 = scmp.lt.s32.totalorder %s702_s3, %s702_s3 }
  0x20   : > { %p705_p10 = pnand %p703_p9, %p691_p13  ;;  %p712_p4 = por %p711_p6, %p710_p2 }
  0x22   : > { %p706_p1 = pneg %p705_p10 }
  0x24   : > { %p713_p8 = pnand %p712_p4, %p706_p1 }
  0x26   : > { %716 = shalt.err (!%p713_p8)
}
  0x27   : > { %s820_s4 = smov 128   ;;  %s821_s5 = smov 8  }
  0x28   : > { %641 = dma.hbm_to_vmem [thread:$0]  (!%p890_p11), %s1042_s0, 8192, %s883_s19, [#allocation3], %s820_s4, %s820_s4, %s821_s5  }
  0x29   : > { %p45_p2 = scmp.eq.s32.totalorder %s44_s23, 0  ;;  %p54_p1 = scmp.ne.s32.totalorder %s813_s11, %s809_s10 }
  0x2a   : > { %p55_p4 = scmp.eq.s32.totalorder %s817_s12, 0  ;;  %p651_p6 = scmp.lt.s32.totalorder %s817_s12, 2 }
  0x2b   : > { %s926_s8 = scalar_select %p45_p2, %s813_s11, %s47_s22  }
  0x2c   : > { %p56_p8 = por %p55_p4, %p54_p1  ;;  %p1052_p10 = scmp.eq.s32.totalorder %s860_s13, 1 }
  0x2d   : > { %s123_s18 = sand.u32 1, %s813_s11   ;;  %s495_s24 = sshll.u32 %s817_s12, 9 }
  0x2e   : > { %p930_p12 = por %p1052_p10, %p54_p1  ;;  %s484_s25 = sshll.u32 %s123_s18, 5 }
  0x2f   : > { %s939_s27 = scalar_lea.hbm %s1043_s1, %s495_s24  ;;  %s127_s19 = scalar_lea.vmem [#allocation5], %s484_s25 }
  0x30   : > { %s135_s22 = sshll.u32 %s127_s19, 4  ;;  %p941_p11 = pnand %p651_p6, %p56_p8  ;;  %s945_s22 = int_to_ptr.vmem [resolvable:$true] %s135_s22 }
  0x31   : > { %s124_s28 = scalar_lea.sflag [#allocation6], %s123_s18  ;;  %s717_s29 = scalar_lea.hbm %s939_s27, 512 }
  0x32   : > { %p718_p13 = scmp.ne.s32.totalorder %s939_s27, %s717_s29  ;;  %p719_p0 = pneg %p941_p11 }
  0x33   : > { %s722_s4 = scalar_lea.hbm %s1043_s1, 1024  ;;  %p723_p7 = scmp.lt.u32.totalorder %s939_s27, %s1043_s1 }
  0x34   : > { %p720_p3 = pnand %p719_p0, %p718_p13  ;;  %p724_p9 = scmp.lt.u32.totalorder %s722_s4, %s717_s29 }
  0x35   : > { %p726_p1 = scmp.lt.u32.totalorder %s717_s29, %s939_s27 }
  0x36   : > { %p721_p5 = pneg %p720_p3  ;;  %p725_p2 = por %p724_p9, %p723_p7 }
  0x38   : > { %p727_p4 = por %p726_p1, %p725_p2 }
  0x3a   : > { %p728_p6 = pnand %p727_p4, %p721_p5 }
  0x3c   : > { %731 = shalt.err (!%p728_p6)
}
  0x3d   : > { %s732_s7 = scalar_lea.vmem %s945_s22, 512  ;;  %s822_s18 = smov [#allocation5]  }
  0x3e   : > { %p733_p8 = scmp.ne.s32.totalorder %s945_s22, %s732_s7  ;;  %s737_s24 = sshll.u32 %s822_s18, 4  ;;  %s738_s24 = int_to_ptr.vmem [resolvable:$false] %s737_s24 }
  0x3f   : > { %s739_s25 = scalar_lea.vmem %s738_s24, 1024  ;;  %p740_p3 = scmp.lt.s32.totalorder %s945_s22, %s738_s24 }
  0x40   : > { %p735_p10 = pnand %p733_p8, %p719_p0  ;;  %p741_p7 = scmp.lt.s32.totalorder %s739_s25, %s732_s7 }
  0x42   : > { %p736_p13 = pneg %p735_p10  ;;  %p742_p9 = por %p741_p7, %p740_p3 }
  0x44   : > { %p743_p2 = pnand %p742_p9, %p736_p13 }
  0x46   : > { %746 = shalt.err (!%p743_p2)
}
  0x47   : > { %645 = dma.hbm_to_vmem [thread:$0]  (!%p941_p11), %s939_s27, 512, %s945_s22, %s124_s28  }
  0x48   : > { %p1055_p5 = scmp.ne.s32.totalorder %s1050_s17, 0 }
  0x49   : > { %p1056_p0 = scmp.eq.s32.totalorder (!%p1055_p5), %s860_s13, 0 }
  0x4a   : > { %144 = sbr.rel (%p1055_p5) target bundleno = 354 (0x162), region = 28 }
  0x51   : > { %792 = dma.done.wait (%p1056_p0), [#allocation3], 8192   ;;  %p1057_p1 = pmov %p1056_p0 }
  0x52   : > { %s979_s20 = sand.u32 1, %s809_s10   ;;  %p1058_p11 = scmp.ne.s32.totalorder %s1048_s15, 0 }
  0x53   : > { %794 = vsyncadd (%p1057_p1), [#allocation3], 4294959104  ;;  %s489_s26 = sshll.u32 %s979_s20, 5  ;;  %s151_s19 = scalar_lea.sflag [#allocation6], %s979_s20 }
  0x54   : > { %s983_s23 = scalar_lea.vmem [#allocation5], %s489_s26 }
  0x55   : > { %796 = dma.done.wait (%p1058_p11), %s151_s19, 512  }
  0x56   : > { %798 = vsyncadd (%p1058_p11), %s151_s19, 4294966784  ;;  %v195_v0 = vld [vmem:[#allocation2 + $0x80] sm:$0xff]  ;;  %v196_v1 = vld [vmem:[#allocation2 + $0x88] sm:$0xff]  ;;  %s490_s15 = sshll.u32 %s979_s20, 3  ;;  %s492_s17 = sshll.u32 %s860_s13, 7 }
  0x57   : > { %v227_v2 = vld [vmem:[#allocation2 + $0x180] sm:$0xff]  ;;  %v566_v3 = vpack.c.bf16 %v196_v1, %v195_v0  ;;  %v228_v4 = vld [vmem:[#allocation2 + $0x188] sm:$0xff]  ;;  %v197_v11 = vld [vmem:[#allocation2 + $0x90] sm:$0xff]  ;;  %s174_s27 = scalar_lea.vmem [#allocation7], %s490_s15  ;;  %s998_s30 = scalar_lea.hbm %s1044_s2, %s492_s17 }
  0x58   : > { %v179_v5 = vld [vmem:[#allocation2] sm:$0xff]  ;;  %v180_v6 = vld [vmem:[#allocation2 + $0x8] sm:$0xff]  ;;  %v598_v7 = vpack.c.bf16 %v228_v4, %v227_v2  ;;  %v198_v13 = vld [vmem:[#allocation2 + $0x98] sm:$0xff]  ;;  %s398_s22 = sshll.u32 %s174_s27, 4  ;;  %s385_s3 = scalar_lea.sflag [#allocation4], %s979_s20  ;;  %s1000_s22 = int_to_ptr.vmem [resolvable:$true] %s398_s22 }
  0x59   : > { %v568_v8 = vpack.c.bf16 %v180_v6, %v179_v5  ;;  %v211_v9 = vld [vmem:[#allocation2 + $0x100] sm:$0xff]  ;;  %v212_v10 = vld [vmem:[#allocation2 + $0x108] sm:$0xff]  ;;  %567 = vmatprep.subr.bf16.mxu0 %v566_v3  ;;  %v229_v14 = vld [vmem:[#allocation2 + $0x190] sm:$0xff]  ;;  %v570_v16 = vpack.c.bf16 %v198_v13, %v197_v11  ;;  %s747_s4 = scalar_lea.vmem %s1000_s22, 128  ;;  %s823_s13 = smov [#allocation7]  }
  0x5a   : > { %v600_v12 = vpack.c.bf16 %v212_v10, %v211_v9  ;;  %v230_v15 = vld [vmem:[#allocation2 + $0x198] sm:$0xff]  ;;  %599 = vmatprep.subr.bf16.mxu1 %v598_v7  ;;  %v181_v18 = vld [vmem:[#allocation2 + $0x10] sm:$0xff]  ;;  %v199_v23 = vld [vmem:[#allocation2 + $0xa0] sm:$0xff]  ;;  %p748_p4 = scmp.ne.s32.totalorder %s1000_s22, %s747_s4  ;;  %s751_s5 = sshll.u32 %s823_s13, 4  ;;  %s752_s5 = int_to_ptr.vmem [resolvable:$false] %s751_s5 }
  0x5b   : > { %569 = vmatpush3.bf16.msra.mxu0 %v568_v8  ;;  %v602_v17 = vpack.c.bf16 %v230_v15, %v229_v14  ;;  %v182_v19 = vld [vmem:[#allocation2 + $0x18] sm:$0xff]  ;;  %v213_v20 = vld [vmem:[#allocation2 + $0x110] sm:$0xff]  ;;  %v200_v24 = vld [vmem:[#allocation2 + $0xa8] sm:$0xff]  ;;  %s753_s6 = scalar_lea.vmem %s752_s5, 256  ;;  %p754_p10 = scmp.lt.s32.totalorder %s1000_s22, %s752_s5 }
  0x5c   : > { %601 = vmatpush3.bf16.msra.mxu1 %v600_v12  ;;  %v572_v21 = vpack.c.bf16 %v182_v19, %v181_v18  ;;  %v214_v22 = vld [vmem:[#allocation2 + $0x118] sm:$0xff]  ;;  %571 = vmatprep.subr.bf16.mxu0 %v570_v16  ;;  %v574_v26 = vpack.c.bf16 %v200_v24, %v199_v23  ;;  %v231_v27 = vld [vmem:[#allocation2 + $0x1a0] sm:$0xff]  ;;  %v232_v28 = vld [vmem:[#allocation2 + $0x1a8] sm:$0xff]  ;;  %p749_p6 = pnand %p748_p4, %p930_p12  ;;  %p755_p13 = scmp.lt.s32.totalorder %s753_s6, %s747_s4 }
  0x5d   : > { %603 = vmatprep.subr.bf16.mxu1 %v602_v17  ;;  %v604_v25 = vpack.c.bf16 %v214_v22, %v213_v20  ;;  %v183_v29 = vld [vmem:[#allocation2 + $0x20] sm:$0xff]  ;;  %v606_v30 = vpack.c.bf16 %v232_v28, %v231_v27  ;;  %v184_v31 = vld [vmem:[#allocation2 + $0x28] sm:$0xff]  ;;  %v201_v35 = vld [vmem:[#allocation2 + $0xb0] sm:$0xff] }
  0x5e   : > { %v215_v32 = vld [vmem:[#allocation2 + $0x120] sm:$0xff]  ;;  %v216_v33 = vld [vmem:[#allocation2 + $0x128] sm:$0xff]  ;;  %v576_v34 = vpack.c.bf16 %v184_v31, %v183_v29  ;;  %v202_v36 = vld [vmem:[#allocation2 + $0xb8] sm:$0xff]  ;;  %p750_p8 = pneg %p749_p6  ;;  %p756_p3 = por %p755_p13, %p754_p10 }
  0x5f   : > { %573 = vmatpush3.bf16.msra.mxu0 %v572_v21  ;;  %v233_v37 = vld [vmem:[#allocation2 + $0x1b0] sm:$0xff]  ;;  %v608_v38 = vpack.c.bf16 %v216_v33, %v215_v32  ;;  %v578_v39 = vpack.c.bf16 %v202_v36, %v201_v35  ;;  %v234_v40 = vld [vmem:[#allocation2 + $0x1b8] sm:$0xff]  ;;  %v203_v46 = vld [vmem:[#allocation2 + $0xc0] sm:$0xff] }
  0x60   : > { %605 = vmatpush3.bf16.msra.mxu1 %v604_v25  ;;  %575 = vmatprep.subr.bf16.mxu0 %v574_v26  ;;  %v185_v41 = vld [vmem:[#allocation2 + $0x30] sm:$0xff]  ;;  %v186_v42 = vld [vmem:[#allocation2 + $0x38] sm:$0xff]  ;;  %v610_v43 = vpack.c.bf16 %v234_v40, %v233_v37  ;;  %v204_v47 = vld [vmem:[#allocation2 + $0xc8] sm:$0xff]  ;;  %p757_p7 = pnand %p756_p3, %p750_p8 }
  0x61   : > { %607 = vmatprep.subr.bf16.mxu1 %v606_v30  ;;  %v217_v44 = vld [vmem:[#allocation2 + $0x130] sm:$0xff]  ;;  %v218_v45 = vld [vmem:[#allocation2 + $0x138] sm:$0xff]  ;;  %v235_v48 = vld [vmem:[#allocation2 + $0x1c0] sm:$0xff]  ;;  %v580_v50 = vpack.c.bf16 %v186_v42, %v185_v41  ;;  %v582_v52 = vpack.c.bf16 %v204_v47, %v203_v46 }
  0x62   : > { %v236_v49 = vld [vmem:[#allocation2 + $0x1c8] sm:$0xff]  ;;  %v612_v51 = vpack.c.bf16 %v218_v45, %v217_v44  ;;  %v187_v53 = vld [vmem:[#allocation2 + $0x40] sm:$0xff]  ;;  %v205_v58 = vld [vmem:[#allocation2 + $0xd0] sm:$0xff] }
  0x63   : > { %577 = vmatpush3.bf16.msra.mxu0 %v576_v34  ;;  %v188_v54 = vld [vmem:[#allocation2 + $0x48] sm:$0xff]  ;;  %v219_v55 = vld [vmem:[#allocation2 + $0x140] sm:$0xff]  ;;  %v614_v56 = vpack.c.bf16 %v236_v49, %v235_v48  ;;  %v206_v59 = vld [vmem:[#allocation2 + $0xd8] sm:$0xff] }
  0x64   : > { %609 = vmatpush3.bf16.msra.mxu1 %v608_v38  ;;  %579 = vmatprep.subr.bf16.mxu0 %v578_v39  ;;  %v220_v57 = vld [vmem:[#allocation2 + $0x148] sm:$0xff]  ;;  %v237_v60 = vld [vmem:[#allocation2 + $0x1d0] sm:$0xff]  ;;  %v238_v61 = vld [vmem:[#allocation2 + $0x1d8] sm:$0xff]  ;;  %v584_v62 = vpack.c.bf16 %v188_v54, %v187_v53  ;;  %v586_v0 = vpack.c.bf16 %v206_v59, %v205_v58 }
  0x65   : > { %611 = vmatprep.subr.bf16.mxu1 %v610_v43  ;;  %v616_v63 = vpack.c.bf16 %v220_v57, %v219_v55  ;;  %v189_v1 = vld [vmem:[#allocation2 + $0x50] sm:$0xff]  ;;  %v190_v2 = vld [vmem:[#allocation2 + $0x58] sm:$0xff]  ;;  %v618_v4 = vpack.c.bf16 %v238_v61, %v237_v60  ;;  %v207_v6 = vld [vmem:[#allocation2 + $0xe0] sm:$0xff] }
  0x66   : > { %v221_v3 = vld [vmem:[#allocation2 + $0x150] sm:$0xff]  ;;  %v222_v5 = vld [vmem:[#allocation2 + $0x158] sm:$0xff]  ;;  %v208_v7 = vld [vmem:[#allocation2 + $0xe8] sm:$0xff]  ;;  %v588_v10 = vpack.c.bf16 %v190_v2, %v189_v1 }
  0x67   : > { %581 = vmatpush3.bf16.msra.mxu0 %v580_v50  ;;  %v239_v8 = vld [vmem:[#allocation2 + $0x1e0] sm:$0xff]  ;;  %v240_v9 = vld [vmem:[#allocation2 + $0x1e8] sm:$0xff]  ;;  %v620_v13 = vpack.c.bf16 %v222_v5, %v221_v3  ;;  %v590_v14 = vpack.c.bf16 %v208_v7, %v207_v6  ;;  %v178_v17 = vld [vmem:[%s983_s23 + $0x18] sm:$0xff] }
  0x68   : > { %613 = vmatpush3.bf16.msra.mxu1 %v612_v51  ;;  %583 = vmatprep.subr.bf16.mxu0 %v582_v52  ;;  %v191_v11 = vld [vmem:[#allocation2 + $0x60] sm:$0xff]  ;;  %v192_v12 = vld [vmem:[#allocation2 + $0x68] sm:$0xff]  ;;  %v622_v18 = vpack.c.bf16 %v240_v9, %v239_v8  ;;  %v209_v20 = vld [vmem:[#allocation2 + $0xf0] sm:$0xff] }
  0x69   : > { %615 = vmatprep.subr.bf16.mxu1 %v614_v56  ;;  %v223_v15 = vld [vmem:[#allocation2 + $0x160] sm:$0xff]  ;;  %v176_v16 = vld [vmem:[%s983_s23 + $0x8] sm:$0xff]  ;;  %v210_v21 = vld [vmem:[#allocation2 + $0xf8] sm:$0xff]  ;;  %377 = vmatprep.mubr.f32.mxu1 %v178_v17  ;;  %v592_v24 = vpack.c.bf16 %v192_v12, %v191_v11 }
  0x6a   : > { %v224_v19 = vld [vmem:[#allocation2 + $0x168] sm:$0xff]  ;;  %307 = vmatprep.mubr.f32.mxu0 %v176_v16  ;;  %v241_v22 = vld [vmem:[#allocation2 + $0x1f0] sm:$0xff]  ;;  %v242_v23 = vld [vmem:[#allocation2 + $0x1f8] sm:$0xff]  ;;  %v594_v26 = vpack.c.bf16 %v210_v21, %v209_v20 }
  0x6b   : > { %585 = vmatpush3.bf16.msra.mxu0 %v584_v62  ;;  %v624_v25 = vpack.c.bf16 %v224_v19, %v223_v15  ;;  %v193_v27 = vld [vmem:[#allocation2 + $0x70] sm:$0xff]  ;;  %v194_v28 = vld [vmem:[#allocation2 + $0x78] sm:$0xff]  ;;  %v626_v29 = vpack.c.bf16 %v242_v23, %v241_v22  ;;  %v175_v34 = vld [vmem:[%s983_s23] sm:$0xff] }
  0x6c   : > { %617 = vmatpush3.bf16.msra.mxu1 %v616_v63  ;;  %587 = vmatprep.subr.bf16.mxu0 %v586_v0  ;;  %v225_v30 = vld [vmem:[#allocation2 + $0x170] sm:$0xff]  ;;  %v226_v31 = vld [vmem:[#allocation2 + $0x178] sm:$0xff]  ;;  %v596_v32 = vpack.c.bf16 %v194_v28, %v193_v27 }
  0x6d   : > { %619 = vmatprep.subr.bf16.mxu1 %v618_v4  ;;  %v628_v33 = vpack.c.bf16 %v226_v31, %v225_v30  ;;  %v177_v35 = vld [vmem:[%s983_s23 + $0x10] sm:$0xff] }
  0x6f   : > { %589 = vmatpush3.bf16.msra.mxu0 %v588_v10 }
  0x70   : > { %621 = vmatpush3.bf16.msra.mxu1 %v620_v13  ;;  %591 = vmatprep.subr.bf16.mxu0 %v590_v14 }
  0x71   : > { %623 = vmatprep.subr.bf16.mxu1 %v622_v18 }
  0x73   : > { %593 = vmatpush3.bf16.msra.mxu0 %v592_v24 }
  0x74   : > { %625 = vmatpush3.bf16.msra.mxu1 %v624_v25  ;;  %595 = vmatprep.subr.bf16.mxu0 %v594_v26 }
  0x75   : > { %627 = vmatprep.subr.bf16.mxu1 %v626_v29 }
  0x77   : > { %597 = vmatpush3.bf16.msra.mxu0 %v596_v32 }
  0x78   : > { %629 = vmatpush3.bf16.msra.mxu1 %v628_v33 }
  0x7a   : > { %308 = vmatmul.mubr.f32.vlgmr.msra.gmra.mrb[0].mxu0 %v175_v34 }
  0x7b   : > { %378 = vmatmul.mubr.f32.vlgmr.msra.gmra.mrb[0].mxu1 %v177_v35 }
 0x14d   : > { %v528_v36 = vpop.f32.mrb[0].mxu0 }
 0x14e   : > { %v563_v37 = vpop.f32.mrb[0].mxu1  ;;  %v529_v38 = vpop.f32.mrb[1].mxu0 }
 0x14f   : > { %v530_v39 = vadd.f32 %v529_v38, %v528_v36  ;;  %v564_v40 = vpop.f32.mrb[1].mxu1 }
 0x150   : > { %v565_v41 = vadd.f32 %v564_v40, %v563_v37 }
 0x152   : > { %v380_v42 = vadd.f32 %v565_v41, %v530_v39 }
 0x154   : > { %383 = vst [vmem:[%s174_s27] sm:$0xff] %v380_v42 }
 0x155   : > { %760 = shalt.err (!%p757_p7)
}
 0x156   : > { %s761_s7 = scalar_lea.hbm %s998_s30, 128  ;;  %s765_s25 = scalar_lea.hbm %s1044_s2, 256 }
 0x157   : > { %p762_p9 = scmp.ne.s32.totalorder %s998_s30, %s761_s7  ;;  %p766_p0 = scmp.lt.u32.totalorder %s998_s30, %s1044_s2 }
 0x158   : > { %p767_p1 = scmp.lt.u32.totalorder %s765_s25, %s761_s7  ;;  %p769_p4 = scmp.lt.u32.totalorder %s761_s7, %s998_s30 }
 0x159   : > { %p763_p2 = pnand %p762_p9, %p930_p12 }
 0x15a   : > { %p768_p11 = por %p767_p1, %p766_p0 }
 0x15b   : > { %p764_p5 = pneg %p763_p2 }
 0x15c   : > { %p770_p6 = por %p769_p4, %p768_p11 }
 0x15e   : > { %p771_p8 = pnand %p770_p6, %p764_p5 }
 0x160   : > { %774 = shalt.err (!%p771_p8)
}
 0x161   : > { %636 = dma.vmem_to_hbm [thread:$0]  (%p930_p12), %s1000_s22, 128, %s998_s30, %s385_s3  }
 0x162 PF: > { %s410_s19 = sand.u32 1, %s805_s9   ;;  %p1059_p10 = scmp.ne.s32.totalorder %s1049_s16, 0 }
 0x163   : > { %p1060_p13 = scmp.ge.s32.totalorder %s817_s12, 2  ;;  %s411_s23 = scalar_lea.sflag [#allocation4], %s410_s19 }
 0x165   : > { %p647_p3 = pnand %p1060_p13, %p1059_p10 }
 0x167   : > { %800 = dma.done.wait (!%p647_p3), %s411_s23, 128  }
 0x168   : > { %802 = vsyncadd (!%p647_p3), %s411_s23, 4294967168  ;;  %p16_p7 = scmp.ge.s32.totalorder %s895_s21, 4   ;;  %s1061_s9 = smov %s809_s10 }
 0x169   : > { %s1062_s10 = smov %s813_s11  ;;  %s1063_s11 = smov %s926_s8 }
 0x16a   : > { %s1064_s12 = smov %s895_s21  ;;  %18 = sbr.rel (!%p16_p7) target bundleno = 6 (0x6), region = 78 }
 0x171   :  { %416 = vsyncpa [#allocation3], 1 }
 0x172   :  { %418 = vsyncpa [#allocation3 + $0x1], 1 }
 0x173   :  { %419 = vsyncpa [#allocation6], 1 }
 0x174   :  { %421 = vsyncpa [#allocation6 + $0x1], 1 }
 0x175   :  { %422 = vsyncpa [#allocation4], 1 }
 0x176   :  { %424 = vsyncpa [#allocation4 + $0x1], 1 }

</bundles_post_ra>
